<compile_context>
chip_gen: v7x
topology: tpu7x:2x2x1
jax: 0.10.0
libtpu: 0.0.40
codegen_flags: <defaults>
</compile_context>

<pallas_src>
import math

import jax
import jax.numpy as jnp
from jax.experimental import pallas as pl
from jax.experimental.pallas import tpu as pltpu


_SQRT_HALF = math.sqrt(0.5)


def _gelu_exact(x):
    # nn.GELU() default = exact erf-based GELU (evaluated in f32 here).
    # TODO(synk): switch to the tanh approximation (EUP path) only if profiling
    # ever shows the VALU slot binding for skinny-dim shapes.
    return 0.5 * x * (1.0 + jax.lax.erf(x * _SQRT_HALF))


def _round_up(x, m):
    return (x + m - 1) // m * m


def _tpu_defaults():
    """(default token tile tm, VMEM limit bytes) per TPU generation."""
    kind = ""
    try:
        kind = jax.devices()[0].device_kind.lower()
    except Exception:
        pass
    vmem_cap = None
    try:
        vmem_cap = int(pltpu.get_tpu_info().vmem_capacity_bytes)
    except Exception:
        pass
    small_vmem = vmem_cap is not None and vmem_cap <= (64 << 20)
    if "v7" in kind or small_vmem:
        return 512, 56 << 20            # v7x: 64 MiB physical VMEM, 2 TCs/chip
    if "v6" in kind:
        return 1024, 100 << 20          # v6e: 128 MiB VMEM, ~650 FLOP/B roofline
    if "v5" in kind:
        return 256, 100 << 20           # v5e: 128 MiB VMEM, ~240 FLOP/B roofline
    return 512, 64 << 20                # unknown generation: conservative


def sigma_mlp_kernel(x_ref, wug_ref, wd_ref, o_ref, acc_ref):
    """One (token-tile i, intermediate-tile j) grid step.

    x_ref  : (tm, dim)       token tile (block index constant across j)
    wug_ref: (dim, 2*tn)     fused [up_proj_j | gate_proj_j] weight slab
    wd_ref : (tn, dim)       down_proj weight slab for intermediate chunk j
    o_ref  : (tm, dim)       output tile (written once, at j == last)
    acc_ref: (tm, dim) f32   VMEM accumulator over intermediate chunks
    """
    j = pl.program_id(1)

    @pl.when(j == 0)
    def _init():
        acc_ref[...] = jnp.zeros_like(acc_ref)

    tn = wd_ref.shape[0]
    x = x_ref[...]
    # Single fused matmul for up and gate halves (one MXU push per step).
    ug = jnp.dot(x, wug_ref[...], preferred_element_type=jnp.float32)   # (tm, 2*tn)
    up = ug[:, :tn]
    gate = ug[:, tn:]
    h = up * _gelu_exact(gate)                                          # (tm, tn) f32
    # NOTE: intentional precision step — h is rounded to the weight dtype (bf16
    # in the production path) before the down-projection; accumulation stays f32.
    acc_ref[...] += jnp.dot(h.astype(wd_ref.dtype), wd_ref[...],
                            preferred_element_type=jnp.float32)

    @pl.when(j == pl.num_programs(1) - 1)
    def _finalize():
        o_ref[...] = acc_ref[...].astype(o_ref.dtype)


def prepare_sigma_mlp_params(w_up, w_gate, w_down, *, tn=512):
    """One-time parameter prep (run at load time, NOT per forward call).

    Converts PyTorch nn.Linear (out_features, in_features) weights to the layout
    the kernel consumes:
      * transpose to (in, out),
      * zero-pad the intermediate axis to a multiple of the tile tn (padded
        channels are inert: up=0, gelu(0)=0, down-proj rows=0),
      * fuse up_proj and gate_proj into one interleaved (dim, 2*I_pad) slab so
        every intermediate tile j reads a single contiguous (dim, 2*tn) block
        laid out as [up_j | gate_j].

    Returns (wug, wd, tn).
    """
    intermediate, dim = w_up.shape
    assert w_gate.shape == (intermediate, dim)
    assert w_down.shape == (dim, intermediate)

    # Keep tn a multiple of 128 (lane width) and no larger than needed.
    tn = _round_up(min(tn, max(intermediate, 128)), 128)
    i_pad = _round_up(intermediate, tn)

    wu = jnp.asarray(w_up).T        # (dim, I)
    wg = jnp.asarray(w_gate).T      # (dim, I)
    wd = jnp.asarray(w_down).T      # (I, dim)
    if i_pad != intermediate:
        padc = i_pad - intermediate
        wu = jnp.pad(wu, ((0, 0), (0, padc)))
        wg = jnp.pad(wg, ((0, 0), (0, padc)))
        wd = jnp.pad(wd, ((0, padc), (0, 0)))

    num_j = i_pad // tn
    wug = jnp.concatenate(
        [wu.reshape(dim, num_j, tn), wg.reshape(dim, num_j, tn)], axis=2,
    ).reshape(dim, num_j * 2 * tn)
    return wug, wd, tn


def sigma_mlp(x, wug, wd, tn, *, tm=None, vmem_limit_bytes=None, interpret=False):
    """Gated MLP forward: down( up(x) * GELU(gate(x)) ).

    x   : (..., dim)
    wug : (dim, 2*I_pad)  fused/interleaved up+gate weights (see prepare_*)
    wd  : (I_pad, dim)    down_proj weights, intermediate padded to multiple of tn
    tn  : intermediate tile used at prepare time
    tm  : token tile override; default is generation-aware (v6e 1024 / v7x 512 /
          v5e 256), shrunk if the double-buffered working set exceeds VMEM.
    """
    orig_shape = x.shape
    dim = orig_shape[-1]
    i_pad = wd.shape[0]
    assert wug.shape == (dim, 2 * i_pad), (wug.shape, dim, i_pad)
    assert wd.shape == (i_pad, dim)
    assert i_pad % tn == 0 and i_pad >= tn

    x2 = x.reshape(-1, dim)
    T = x2.shape[0]

    x_item = jnp.dtype(x.dtype).itemsize
    w_item = jnp.dtype(wug.dtype).itemsize
    pack = max(8, 32 // x_item)          # sublane pack of the activation dtype

    tm_default, vmem_default = _tpu_defaults()
    if tm is None:
        tm = tm_default
    if vmem_limit_bytes is None:
        vmem_limit_bytes = vmem_default

    # Small batches (decode): split tokens across >= 2 grid steps so both
    # TensorCores of a v7x part get work; larger batches use the full tile so
    # weight-DMA bytes (re-streamed once per token tile) are amortized.
    if T <= tm:
        tm = max(pack, _round_up(-(-T // 2), pack))
    else:
        tm = _round_up(tm, pack)

    # Shrink tm until the double-buffered working set fits the VMEM budget.
    def vmem_est(tm_):
        return (2 * tm_ * dim * x_item          # x tile (double-buffered)
                + 2 * tm_ * dim * x_item        # out tile (double-buffered)
                + 2 * (2 * tn) * dim * w_item   # fused up/gate slab
                + 2 * tn * dim * w_item         # down-proj slab
                + tm_ * dim * 4)                # f32 accumulator scratch
    while tm > pack and vmem_est(tm) + (4 << 20) > vmem_limit_bytes:
        tm = max(pack, _round_up(tm // 2, pack))

    T_pad = _round_up(T, tm)
    if T_pad != T:
        x2 = jnp.pad(x2, ((0, T_pad - T), (0, 0)))

    num_i = T_pad // tm
    num_j = i_pad // tn

    cost = pl.CostEstimate(
        flops=int(6 * T_pad * dim * i_pad + 2 * T_pad * i_pad),
        transcendentals=int(T_pad * i_pad),
        # Weights are re-streamed once per token tile (indexed only by j).
        bytes_accessed=int(2 * T_pad * dim * x_item
                           + num_i * 3 * dim * i_pad * w_item),
    )

    out = pl.pallas_call(
        sigma_mlp_kernel,
        out_shape=jax.ShapeDtypeStruct((T_pad, dim), x.dtype),
        grid_spec=pltpu.PrefetchScalarGridSpec(
            num_scalar_prefetch=0,
            grid=(num_i, num_j),                  # reduction (intermediate) last
            in_specs=[
                pl.BlockSpec((tm, dim), lambda i, j: (i, 0)),      # x tile
                pl.BlockSpec((dim, 2 * tn), lambda i, j: (0, j)),  # [up|gate] slab
                pl.BlockSpec((tn, dim), lambda i, j: (j, 0)),      # down slab
            ],
            out_specs=pl.BlockSpec((tm, dim), lambda i, j: (i, 0)),
            scratch_shapes=[pltpu.VMEM((tm, dim), jnp.float32)],
        ),
        compiler_params=pltpu.CompilerParams(
            dimension_semantics=("parallel", "arbitrary"),
            vmem_limit_bytes=int(vmem_limit_bytes),
        ),
        cost_estimate=cost,
        interpret=interpret,
    )(x2, wug, wd)

    if T_pad != T:
        out = out[:T]
    return out.reshape(orig_shape)


def reference(x, w_up, w_gate, w_down):
    # Pure-JAX reference using PyTorch nn.Linear (out, in) weight layout.
    up = jnp.einsum("...d,id->...i", x, w_up)
    gate = _gelu_exact(jnp.einsum("...d,id->...i", x, w_gate))
    return jnp.einsum("...i,di->...d", up * gate, w_down)


if __name__ == "__main__":
    B, S, dim, intermediate = 2, 8, 32, 64
    key = jax.random.PRNGKey(0)
    kx, ku, kg, kd = jax.random.split(key, 4)

    x = jax.random.normal(kx, (B, S, dim), dtype=jnp.float32)
    # PyTorch nn.Linear weight shapes: (out_features, in_features)
    w_up = jax.random.normal(ku, (intermediate, dim), jnp.float32) / jnp.sqrt(dim)
    w_gate = jax.random.normal(kg, (intermediate, dim), jnp.float32) / jnp.sqrt(dim)
    w_down = jax.random.normal(kd, (dim, intermediate), jnp.float32) / jnp.sqrt(intermediate)

    # One-time parameter prep (transpose + pad + fuse up/gate).
    wug, wd, tn = prepare_sigma_mlp_params(w_up, w_gate, w_down)

    # f32 correctness check vs pure-JAX reference.
    y = jax.block_until_ready(sigma_mlp(x, wug, wd, tn))
    y_ref = reference(x, w_up, w_gate, w_down)
    assert y.shape == x.shape
    assert jnp.allclose(y, y_ref, atol=1e-5, rtol=1e-5), "f32 mismatch vs reference"

    # bf16 path (production regime: bf16 inputs/weights, f32 MXU accumulation).
    wug_b, wd_b, tn_b = prepare_sigma_mlp_params(
        w_up.astype(jnp.bfloat16),
        w_gate.astype(jnp.bfloat16),
        w_down.astype(jnp.bfloat16))
    yb = jax.block_until_ready(
        sigma_mlp(x.astype(jnp.bfloat16), wug_b, wd_b, tn_b))
    assert yb.shape == x.shape
    assert jnp.allclose(yb.astype(jnp.float32), y_ref, atol=0.15, rtol=0.15), \
        "bf16 mismatch vs reference"

    print("KERNEL_OK")
</pallas_src>

<mosaic_0001>
module attributes {stable_mosaic.version = 11 : i64} {
  func.func @sigma_mlp_kernel(%arg0: i32, %arg1: i32, %arg2: memref<8x32xf32, #tpu.memory_space<vmem>>, %arg3: memref<32x256xf32, #tpu.memory_space<vmem>>, %arg4: memref<128x32xf32, #tpu.memory_space<vmem>>, %arg5: memref<8x32xf32, #tpu.memory_space<vmem>>, %arg6: memref<8x32xf32, #tpu.memory_space<vmem>>) attributes {dimension_semantics = [#tpu.dimension_semantics<parallel>, #tpu.dimension_semantics<arbitrary>], iteration_bounds = array<i64: 2, 1>, scalar_prefetch = 0 : i64, scratch_operands = 1 : i64, tpu.core_type = #tpu.core_type<tc>, window_params = [{transform_indices = @transform_0, window_bounds = array<i64: 8, 32>}, {transform_indices = @transform_1, window_bounds = array<i64: 32, 256>}, {transform_indices = @transform_2, window_bounds = array<i64: 128, 32>}, {transform_indices = @transform_3, window_bounds = array<i64: 8, 32>}]} {
    %c0_i32 = arith.constant 0 : i32
    %0 = arith.cmpi eq, %arg1, %c0_i32 : i32
    %1 = arith.extui %0 : i1 to i32
    %c0_i32_0 = arith.constant 0 : i32
    %2 = arith.cmpi ne, %1, %c0_i32_0 : i32
    scf.if %2 {
      %cst_16 = arith.constant 0.000000e+00 : f32
      %25 = vector.broadcast %cst_16 : f32 to vector<8x32xf32>
      %c0_17 = arith.constant 0 : index
      %c0_18 = arith.constant 0 : index
      %26 = vector.load %arg6[%c0_17, %c0_18] : memref<8x32xf32, #tpu.memory_space<vmem>>, vector<8x32xf32>
      tpu.vector_store %arg6[%c0_17, %c0_18], %25 {strides = array<i32>} : memref<8x32xf32, #tpu.memory_space<vmem>>, vector<8x32xf32>,
    } else {
    }
    %c0 = arith.constant 0 : index
    %c0_1 = arith.constant 0 : index
    %3 = vector.load %arg2[%c0, %c0_1] : memref<8x32xf32, #tpu.memory_space<vmem>>, vector<8x32xf32>
    %c0_2 = arith.constant 0 : index
    %c0_3 = arith.constant 0 : index
    %4 = vector.load %arg3[%c0_2, %c0_3] : memref<32x256xf32, #tpu.memory_space<vmem>>, vector<32x256xf32>
    %cst = arith.constant dense<0.000000e+00> : vector<8x256xf32>
    %5 = tpu.matmul %3, %4, %cst {dimension_numbers = #tpu.dot_dimension_numbers<[1], [0], [0], [1], [0, 0, 1, 1], [], []>} : vector<8x32xf32>, vector<32x256xf32>, vector<8x256xf32> -> vector<8x256xf32>
    %6 = vector.extract_strided_slice %5 {offsets = [0, 0], sizes = [8, 128], strides = [1, 1]} : vector<8x256xf32> to vector<8x128xf32>
    %7 = vector.extract_strided_slice %5 {offsets = [0, 128], sizes = [8, 128], strides = [1, 1]} : vector<8x256xf32> to vector<8x128xf32>
    %cst_4 = arith.constant 5.000000e-01 : f32
    %8 = vector.broadcast %cst_4 : f32 to vector<8x128xf32>
    %9 = arith.mulf %8, %7 : vector<8x128xf32>
    %cst_5 = arith.constant 0.707106769 : f32
    %10 = vector.broadcast %cst_5 : f32 to vector<8x128xf32>
    %11 = arith.mulf %7, %10 : vector<8x128xf32>
    %12 = math.erf %11 : vector<8x128xf32>
    %cst_6 = arith.constant 1.000000e+00 : f32
    %13 = vector.broadcast %cst_6 : f32 to vector<8x128xf32>
    %14 = arith.addf %13, %12 : vector<8x128xf32>
    %15 = arith.mulf %9, %14 : vector<8x128xf32>
    %16 = arith.mulf %6, %15 : vector<8x128xf32>
    %c0_7 = arith.constant 0 : index
    %c0_8 = arith.constant 0 : index
    %17 = vector.load %arg6[%c0_7, %c0_8] : memref<8x32xf32, #tpu.memory_space<vmem>>, vector<8x32xf32>
    %c0_9 = arith.constant 0 : index
    %c0_10 = arith.constant 0 : index
    %18 = vector.load %arg4[%c0_9, %c0_10] : memref<128x32xf32, #tpu.memory_space<vmem>>, vector<128x32xf32>
    %cst_11 = arith.constant dense<0.000000e+00> : vector<8x32xf32>
    %19 = tpu.matmul %16, %18, %cst_11 {dimension_numbers = #tpu.dot_dimension_numbers<[1], [0], [0], [1], [0, 0, 1, 1], [], []>} : vector<8x128xf32>, vector<128x32xf32>, vector<8x32xf32> -> vector<8x32xf32>
    %20 = arith.addf %17, %19 : vector<8x32xf32>
    %c0_12 = arith.constant 0 : index
    %c0_13 = arith.constant 0 : index
    %21 = vector.load %arg6[%c0_12, %c0_13] : memref<8x32xf32, #tpu.memory_space<vmem>>, vector<8x32xf32>
    tpu.vector_store %arg6[%c0_12, %c0_13], %20 {strides = array<i32>} : memref<8x32xf32, #tpu.memory_space<vmem>>, vector<8x32xf32>,
    %c0_i32_14 = arith.constant 0 : i32
    %22 = arith.cmpi eq, %arg1, %c0_i32_14 : i32
    %23 = arith.extui %22 : i1 to i32
    %c0_i32_15 = arith.constant 0 : i32
    %24 = arith.cmpi ne, %23, %c0_i32_15 : i32
    scf.if %24 {
      %c0_16 = arith.constant 0 : index
      %c0_17 = arith.constant 0 : index
      %25 = vector.load %arg6[%c0_16, %c0_17] : memref<8x32xf32, #tpu.memory_space<vmem>>, vector<8x32xf32>
      %c0_18 = arith.constant 0 : index
      %c0_19 = arith.constant 0 : index
      %26 = vector.load %arg5[%c0_18, %c0_19] : memref<8x32xf32, #tpu.memory_space<vmem>>, vector<8x32xf32>
      tpu.vector_store %arg5[%c0_18, %c0_19], %25 {strides = array<i32>} : memref<8x32xf32, #tpu.memory_space<vmem>>, vector<8x32xf32>,
    } else {
    }
    return
  }
  func.func @transform_0(%arg0: i32, %arg1: i32) -> (i32, i32) {
    %c0_i32 = arith.constant 0 : i32
    %c0_i32_0 = arith.constant 0 : i32
    return %arg0, %c0_i32 : i32, i32
  }
  func.func @transform_1(%arg0: i32, %arg1: i32) -> (i32, i32) {
    %c0_i32 = arith.constant 0 : i32
    %c0_i32_0 = arith.constant 0 : i32
    return %c0_i32, %arg1 : i32, i32
  }
  func.func @transform_2(%arg0: i32, %arg1: i32) -> (i32, i32) {
    %c0_i32 = arith.constant 0 : i32
    %c0_i32_0 = arith.constant 0 : i32
    return %arg1, %c0_i32 : i32, i32
  }
  func.func @transform_3(%arg0: i32, %arg1: i32) -> (i32, i32) {
    %c0_i32 = arith.constant 0 : i32
    %c0_i32_0 = arith.constant 0 : i32
    return %arg0, %c0_i32 : i32, i32
  }
}

</mosaic_0001>

<bundles_post_ra>
// kernel: tpu_custom_call.1
= control target key start
LH: loop header
LB: loop body
LE: loop exit
PB: predicated region body
PF: predicated region fallthrough
CT: control target
= control target key end

     0   :  { %8 = vsyncpa [#allocation4], 0  ;;  %s1213_s0 = inlined_call_operand.hbm [shape: f32[16,32], index: 0, kind: input, shape index: {}]   ;;  %s1214_s1 = inlined_call_operand.hbm [shape: f32[32,256], index: 1, kind: input, shape index: {}]   ;;  %s1215_s2 = inlined_call_operand.hbm [shape: f32[128,32], index: 2, kind: input, shape index: {}]   ;;  %s1216_s3 = inlined_call_operand.hbm [shape: f32[16,32], index: 3, kind: output, shape index: {}]  }
   0x1   :  { %10 = vsyncpa [#allocation4 + $0x1], 0 }
   0x2   :  { %11 = vsyncpa [#allocation7], 0 }
   0x3   :  { %12 = vsyncpa [#allocation5], 0 }
   0x4   :  { %14 = vsyncpa [#allocation5 + $0x1], 0  ;;  %s949_s12 = smov 0   ;;  %s951_s13 = smov 0  }
   0x5   :  { %s953_s14 = smov 0   ;;  %s955_s15 = smov 0  }
   0x6   :  { %s957_s16 = smov 0   ;;  %s959_s17 = smov 0  }
   0x7 LB: > { %s550_s18 = sadd.s32 4294967295, %s916_s17   ;;  %s551_s19 = sadd.s32 4294967294, %s916_s17   ;;  %s916_s17 = sphi %s959_s17, %s20_s17   ;;  %s912_s16 = sphi %s957_s16, %s1238_s16   ;;  %s908_s15 = sphi %s955_s15, %s1237_s15   ;;  %s904_s14 = sphi %s953_s14, %s1236_s14   ;;  %s900_s13 = sphi %s951_s13, %s1235_s13   ;;  %s896_s12 = sphi %s949_s12, %s1234_s12  }
   0x8   : > { %p52_p0 = scmp.ne.s32.totalorder %s900_s13, %s896_s12  ;;  %p983_p1 = scmp.eq.s32.totalorder %s550_s18, 0 }
   0x9   : > { %p987_p2 = scmp.eq.s32.totalorder %s550_s18, 1  ;;  %p134_p3 = scmp.eq.s32.totalorder %s551_s19, 1 }
   0xa   : > { %s1221_s20 = scalar_select %p983_p1, 1, 0 }
   0xb   : > { %p993_p4 = por %p983_p1, %p52_p0  ;;  %p552_p5 = scmp.ge.s32.totalorder %s916_s17, 1 }
   0xc   : > { %p998_p6 = por %p134_p3, %p52_p0  ;;  %p141_p7 = scmp.lt.s32.totalorder %s916_s17, 3 }
   0xd   : > { %s1223_s22 = scalar_select %p993_p4, 1, 0 }
   0xe   : > { %s1224_s23 = scalar_select %p998_p6, 1, 0 }
   0xf   : > { %p1003_p8 = pnand %p552_p5, %p141_p7  ;;  %s918_s25 = smov [#allocation6]  }
  0x10   : > { %s156_s26 = sshll.u32 %s918_s25, 4  ;;  %s919_s28 = smov [#allocation8]   ;;  %s1007_s26 = int_to_ptr.vmem [resolvable:$true] %s156_s26 }
  0x11   : > { %p664_p9 = pneg %p1003_p8  ;;  %s172_s29 = sshll.u32 %s919_s28, 4  ;;  %s1018_s29 = int_to_ptr.vmem [resolvable:$true] %s172_s29 }
  0x12   : > { %s744_s5 = scalar_lea.hbm %s1214_s1, 1024 }
  0x13   : > { %p1014_p11 = pnand %p664_p9, %p983_p1  ;;  %p745_p12 = scmp.ne.s32.totalorder %s1214_s1, %s744_s5 }
  0x14   : > { %p751_p5 = scmp.lt.u32.totalorder %s744_s5, %s1214_s1 }
  0x15   : > { %p746_p13 = pneg %p1014_p11 }
  0x17   : > { %p747_p0 = pnand %p746_p13, %p745_p12 }
  0x19   : > { %p748_p3 = pneg %p747_p0 }
  0x1b   : > { %p753_p7 = pnand %p751_p5, %p748_p3 }
  0x1d   : > { %756 = shalt.err (!%p753_p7)
}
  0x1e   : > { %s757_s10 = scalar_lea.vmem %s1007_s26, 1024  ;;  %p765_p1 = scmp.lt.s32.totalorder %s1007_s26, %s1007_s26 }
  0x1f   : > { %p758_p9 = scmp.ne.s32.totalorder %s1007_s26, %s757_s10  ;;  %p766_p12 = scmp.lt.s32.totalorder %s757_s10, %s757_s10 }
  0x21   : > { %p760_p10 = pnand %p758_p9, %p746_p13  ;;  %p767_p0 = por %p766_p12, %p765_p1 }
  0x23   : > { %p761_p6 = pneg %p760_p10 }
  0x25   : > { %p768_p4 = pnand %p767_p0, %p761_p6 }
  0x27   : > { %771 = shalt.err (!%p768_p4)
}
  0x28   : > { %s920_s11 = smov 256   ;;  %s921_s18 = smov 16  }
  0x29   : > { %667 = dma.hbm_to_vmem [thread:$0]  (!%p1014_p11), %s1214_s1, 1024, %s1007_s26, [#allocation7], %s920_s11, %s920_s11, %s921_s18  }
  0x2a   : > { %s772_s4 = scalar_lea.hbm %s1215_s2, 2048 }
  0x2b   : > { %p773_p1 = scmp.ne.s32.totalorder %s1215_s2, %s772_s4  ;;  %p779_p10 = scmp.lt.u32.totalorder %s772_s4, %s1215_s2 }
  0x2d   : > { %p775_p4 = pnand %p773_p1, %p746_p13 }
  0x2f   : > { %p776_p6 = pneg %p775_p4 }
  0x31   : > { %p781_p3 = pnand %p779_p10, %p776_p6 }
  0x33   : > { %784 = shalt.err (!%p781_p3)
}
  0x34   : > { %s785_s26 = scalar_lea.vmem %s1018_s29, 2048  ;;  %p793_p12 = scmp.lt.s32.totalorder %s1018_s29, %s1018_s29 }
  0x35   : > { %p786_p5 = scmp.ne.s32.totalorder %s1018_s29, %s785_s26  ;;  %p794_p0 = scmp.lt.s32.totalorder %s785_s26, %s785_s26 }
  0x37   : > { %p788_p7 = pnand %p786_p5, %p746_p13  ;;  %p795_p1 = por %p794_p0, %p793_p12 }
  0x39   : > { %p789_p9 = pneg %p788_p7 }
  0x3b   : > { %p796_p4 = pnand %p795_p1, %p789_p9 }
  0x3d   : > { %799 = shalt.err (!%p796_p4)
}
  0x3e   : > { %s922_s9 = smov 128   ;;  %s923_s10 = smov 8  }
  0x3f   : > { %670 = dma.hbm_to_vmem [thread:$0]  (!%p1014_p11), %s1215_s2, 2048, %s1018_s29, [#allocation7], %s922_s9, %s922_s9, %s923_s10  }
  0x40   : > { %s32_s19 = sadd.s32 1, %s912_s16  ;;  %s39_s25 = sadd.s32 1, %s904_s14 }
  0x41   : > { %p34_p13 = scmp.ge.s32.totalorder %s32_s19, 2  ;;  %p46_p6 = scmp.ne.s32.totalorder %s904_s14, %s900_s13 }
  0x42   : > { %p47_p10 = scmp.eq.s32.totalorder %s916_s17, 0  ;;  %p681_p3 = scmp.lt.s32.totalorder %s916_s17, 2 }
  0x43   : > { %s1240_s19 = smov (%p34_p13, %s32_s19), 0  ;;  %p1082_p7 = por %p987_p2, %p46_p6 }
  0x44   : > { %p48_p5 = por %p47_p10, %p46_p6  ;;  %s36_s27 = ssub.s32 %s912_s16, %s1240_s19 }
  0x45   : > { %s1227_s28 = scalar_select %p1082_p7, 1, 0 }
  0x46   : > { %s186_s30 = sand.u32 1, %s904_s14   ;;  %p37_p9 = scmp.eq.s32.totalorder %s36_s27, 0 }
  0x47   : > { %s556_s29 = sshll.u32 %s186_s30, 3  ;;  %s557_s4 = sshll.u32 %s912_s16, 7 }
  0x48   : > { %s1091_s5 = scalar_select %p37_p9, %s904_s14, %s39_s25  }
  0x49   : > { %s1096_s8 = scalar_lea.hbm %s1213_s0, %s557_s4  ;;  %s190_s21 = scalar_lea.vmem [#allocation3], %s556_s29 }
  0x4a   : > { %s197_s26 = sshll.u32 %s190_s21, 4  ;;  %p1100_p2 = pnand %p681_p3, %p48_p5  ;;  %s1104_s26 = int_to_ptr.vmem [resolvable:$true] %s197_s26 }
  0x4b   : > { %s187_s10 = scalar_lea.sflag [#allocation4], %s186_s30  ;;  %s800_s11 = scalar_lea.hbm %s1096_s8, 128 }
  0x4c   : > { %p801_p11 = scmp.ne.s32.totalorder %s1096_s8, %s800_s11  ;;  %p802_p12 = pneg %p1100_p2 }
  0x4d   : > { %s805_s27 = scalar_lea.hbm %s1213_s0, 256  ;;  %p806_p4 = scmp.lt.u32.totalorder %s1096_s8, %s1213_s0 }
  0x4e   : > { %p803_p0 = pnand %p802_p12, %p801_p11  ;;  %p807_p13 = scmp.lt.u32.totalorder %s805_s27, %s800_s11 }
  0x4f   : > { %p809_p10 = scmp.lt.u32.totalorder %s800_s11, %s1096_s8 }
  0x50   : > { %p804_p1 = pneg %p803_p0  ;;  %p808_p6 = por %p807_p13, %p806_p4 }
  0x52   : > { %p810_p3 = por %p809_p10, %p808_p6 }
  0x54   : > { %p811_p5 = pnand %p810_p3, %p804_p1 }
  0x56   : > { %814 = shalt.err (!%p811_p5)
}
  0x57   : > { %s815_s30 = scalar_lea.vmem %s1104_s26, 128  ;;  %s924_s6 = smov [#allocation3]  }
  0x58   : > { %p816_p9 = scmp.ne.s32.totalorder %s1104_s26, %s815_s30  ;;  %s820_s7 = sshll.u32 %s924_s6, 4  ;;  %s821_s7 = int_to_ptr.vmem [resolvable:$false] %s820_s7 }
  0x59   : > { %s822_s21 = scalar_lea.vmem %s821_s7, 256  ;;  %p823_p7 = scmp.lt.s32.totalorder %s1104_s26, %s821_s7 }
  0x5a   : > { %p818_p11 = pnand %p816_p9, %p802_p12  ;;  %p824_p4 = scmp.lt.s32.totalorder %s822_s21, %s815_s30 }
  0x5c   : > { %p819_p0 = pneg %p818_p11  ;;  %p825_p13 = por %p824_p4, %p823_p7 }
  0x5e   : > { %p826_p6 = pnand %p825_p13, %p819_p0 }
  0x60   : > { %829 = shalt.err (!%p826_p6)
}
  0x61   : > { %674 = dma.hbm_to_vmem [thread:$0]  (!%p1100_p2), %s1096_s8, 128, %s1104_s26, %s187_s10  }
  0x62   : > { %206 = sbr.rel (%p1003_p8) target bundleno = 589 (0x24d), region = 32  ;;  %s1134_s11 = sand.u32 (!%p1003_p8), 1, %s900_s13  }
  0x63   : > { %s559_s18 = sshll.u32 (!%p1003_p8), %s1134_s11, 3  ;;  %s209_s25 = scalar_lea.sflag (!%p1003_p8), [#allocation4], %s1134_s11 }
  0x64   : > { %s1140_s27 = scalar_lea.vmem (!%p1003_p8), [#allocation3], %s559_s18  ;;  %p1229_p7 = scmp.ne.s32.totalorder (!%p1003_p8), %s1223_s22, 0 }
  0x69   : > { %883 = dma.done.wait (%p1229_p7), %s209_s25, 128  }
  0x6a   : > { %885 = vsyncadd (%p1229_p7), %s209_s25, 4294967168  ;;  %p1230_p2 = scmp.ne.s32.totalorder %s1221_s20, 0 }
  0x6c   : > { %887 = dma.done.wait (%p1230_p2), [#allocation7], 3072  }
  0x6d   : > { %889 = vsyncadd (%p1230_p2), [#allocation7], 4294964224  ;;  %vm249_vm0 = vcmask 261120   ;;  %v925_v0 = vmov 0.0   ;;  %v926_v1 = vmov 0.0|0.0   ;;  %v253_v2 = vld [vmem:[#allocation6 + $0x8] sm:$0xff] }
  0x6e   : > { %328 = vmatprep.mubr.f32.mxu0 %v925_v0  ;;  %250 = vst.msk [vmem:[#allocation2] sm:$0xff] %vm249_vm0, %v925_v0  ;;  %628 = vmatprep.subr.bf16.mxu1 %v926_v1  ;;  %v255_v3 = vld [vmem:[#allocation6 + $0x18] sm:$0xff]  ;;  %v252_v4 = vld [vmem:[#allocation6] sm:$0xff]  ;;  %v254_v6 = vld [vmem:[#allocation6 + $0x10] sm:$0xff]  ;;  %vm927_vm1 = vmmov 0   ;;  %s565_s20 = sshll.u32 %s908_s15, 7 }
  0x6f   : > { %v620_v5 = vpack.c.bf16 %v255_v3, %v253_v2  ;;  %v257_v7 = vld [vmem:[#allocation6 + $0x28] sm:$0xff]  ;;  %v259_v8 = vld [vmem:[#allocation6 + $0x38] sm:$0xff]  ;;  %v622_v9 = vpack.c.bf16 %v254_v6, %v252_v4  ;;  %v256_v11 = vld [vmem:[#allocation6 + $0x20] sm:$0xff]  ;;  %617 = vmatprep.mubr.msk.f32.mxu1 %vm927_vm1, %v925_v0  ;;  %s242_s22 = scalar_lea.vmem [#allocation9], %s559_s18  ;;  %s1163_s9 = scalar_lea.hbm %s1216_s3, %s565_s20 }
  0x70   : > { %v624_v10 = vpack.c.bf16 %v259_v8, %v257_v7  ;;  %v258_v12 = vld [vmem:[#allocation6 + $0x30] sm:$0xff]  ;;  %v342_v13 = vld [vmem:[#allocation8] sm:$0xff]  ;;  %v343_v14 = vld [vmem:[#allocation8 + $0x8] sm:$0xff]  ;;  %s449_s24 = sshll.u32 %s242_s22, 4  ;;  %s436_s10 = scalar_lea.sflag [#allocation5], %s1134_s11  ;;  %s1165_s24 = int_to_ptr.vmem [resolvable:$true] %s449_s24 }
  0x71   : > { %621 = vmatprep.subr.bf16.mxu0 %v620_v5  ;;  %v344_v15 = vld [vmem:[#allocation8 + $0x10] sm:$0xff]  ;;  %v626_v16 = vpack.c.bf16 %v258_v12, %v256_v11  ;;  %v629_v17 = vpack.c.bf16 %v343_v14, %v342_v13  ;;  %v345_v18 = vld [vmem:[#allocation8 + $0x18] sm:$0xff]  ;;  %v346_v20 = vld [vmem:[#allocation8 + $0x20] sm:$0xff]  ;;  %s830_s29 = scalar_lea.vmem %s1165_s24, 128  ;;  %p1231_p12 = scmp.ne.s32.totalorder %s1227_s28, 0 }
  0x72   : > { %623 = vmatpush1.bf16.msra.mxu0 %v622_v9  ;;  %v632_v19 = vpack.c.bf16 %v345_v18, %v344_v15  ;;  %v347_v21 = vld [vmem:[#allocation8 + $0x28] sm:$0xff]  ;;  %v251_v22 = vld [vmem:[%s1140_s27] sm:$0xff]  ;;  %v350_v27 = vld [vmem:[#allocation8 + $0x40] sm:$0xff]  ;;  %p831_p8 = scmp.ne.s32.totalorder %s1165_s24, %s830_s29  ;;  %s928_s15 = smov [#allocation9]  }
  0x73   : > { %625 = vmatprep.subr.bf16.mxu0 %v624_v10  ;;  %630 = vmatpush3.bf16.msra.mxu1 %v629_v17  ;;  %v635_v23 = vpack.c.bf16 %v347_v21, %v346_v20  ;;  %v348_v24 = vld [vmem:[#allocation8 + $0x30] sm:$0xff]  ;;  %v349_v25 = vld [vmem:[#allocation8 + $0x38] sm:$0xff]  ;;  %v351_v28 = vld [vmem:[#allocation8 + $0x48] sm:$0xff]  ;;  %s834_s4 = sshll.u32 %s928_s15, 4  ;;  %s835_s4 = int_to_ptr.vmem [resolvable:$false] %s834_s4 }
  0x74   : > { %631 = vmatprep.subr.bf16.mxu1 %v926_v1  ;;  %v638_v26 = vpack.c.bf16 %v349_v25, %v348_v24  ;;  %v641_v29 = vpack.c.bf16 %v351_v28, %v350_v27  ;;  %v352_v30 = vld [vmem:[#allocation8 + $0x50] sm:$0xff]  ;;  %v353_v31 = vld [vmem:[#allocation8 + $0x58] sm:$0xff]  ;;  %v354_v33 = vld [vmem:[#allocation8 + $0x60] sm:$0xff]  ;;  %p832_p1 = pnand %p831_p8, %p1231_p12  ;;  %s836_s30 = scalar_lea.vmem %s835_s4, 256 }
  0x75   : > { %v644_v32 = vpack.c.bf16 %v353_v31, %v352_v30  ;;  %v355_v34 = vld [vmem:[#allocation8 + $0x68] sm:$0xff]  ;;  %v356_v36 = vld [vmem:[#allocation8 + $0x70] sm:$0xff]  ;;  %v357_v37 = vld [vmem:[#allocation8 + $0x78] sm:$0xff]  ;;  %p837_p3 = scmp.lt.s32.totalorder %s1165_s24, %s835_s4  ;;  %p838_p5 = scmp.lt.s32.totalorder %s836_s30, %s830_s29 }
  0x76   : > { %627 = vmatpush1.bf16.msra.mxu0 %v626_v16  ;;  %v647_v35 = vpack.c.bf16 %v355_v34, %v354_v33  ;;  %v650_v38 = vpack.c.bf16 %v357_v37, %v356_v36  ;;  %v341_v47 = vld [vmem:[#allocation2] sm:$0xff]  ;;  %p833_p10 = pneg %p832_p1 }
  0x77   : > { %633 = vmatpush3.bf16.msra.mxu1 %v632_v19  ;;  %p839_p9 = por %p838_p5, %p837_p3 }
  0x78   : > { %634 = vmatprep.subr.bf16.mxu1 %v926_v1 }
  0x79   : > { %563 = vmatmul.mubr.msk.f32.vlgmr.msra.gmra.mrb[0].mxu0 %vm249_vm0, %v251_v22  ;;  %p840_p11 = pnand %p839_p9, %p833_p10 }
  0x7b   : > { %636 = vmatpush3.bf16.msra.mxu1 %v635_v23 }
  0x7c   : > { %637 = vmatprep.subr.bf16.mxu1 %v926_v1 }
  0x7f   : > { %639 = vmatpush3.bf16.msra.mxu1 %v638_v26 }
  0x80   : > { %640 = vmatprep.subr.bf16.mxu1 %v926_v1 }
  0x83   : > { %642 = vmatpush3.bf16.msra.mxu1 %v641_v29 }
  0x84   : > { %643 = vmatprep.subr.bf16.mxu1 %v926_v1 }
  0x87   : > { %645 = vmatpush3.bf16.msra.mxu1 %v644_v32 }
  0x88   : > { %646 = vmatprep.subr.bf16.mxu1 %v926_v1 }
  0x8b   : > { %648 = vmatpush3.bf16.msra.mxu1 %v647_v35 }
  0x8c   : > { %649 = vmatprep.subr.bf16.mxu1 %v926_v1 }
  0x8f   : > { %651 = vmatpush3.bf16.msra.mxu1 %v650_v38 }
 0x14c   : > { %v330_v39 = vpop.f32.mrb[0].mxu0 }
 0x14d   : > { %v332_v40 = vpop.f32.mrb[1].mxu0 }
 0x14e   : > { %v336_v41 = vmul.f32 0.70710677, %v332_v40  ;;  %v335_v43 = vmul.f32 0.5, %v332_v40 }
 0x150   : > { %742 = verf.f32 %v336_v41 }
 0x15a   : > { %v743_v42 = vpop.eup %742 }
 0x15b   : > { %v338_v44 = vadd.f32 1.0, %v743_v42 }
 0x15d   : > { %v339_v45 = vmul.f32 %v338_v44, %v335_v43 }
 0x15f   : > { %v340_v46 = vmul.f32 %v339_v45, %v330_v39 }
 0x161   : > { %618 = vmatmul.mubr.f32.vlgmr.msra.gmra.mrb[0].mxu1 %v340_v46 }
 0x234   : > { %v424_v48 = vpop.f32.mrb[0].mxu1 }
 0x235   : > { %v428_v49 = vadd.f32 %v424_v48, %v341_v47  ;;  %v619_v50 = vpop.f32.mrb[1].mxu1 }
 0x237   : > { %429 = vst.msk [vmem:[#allocation2] sm:$0xff] %vm249_vm0, %v428_v49 }
 0x23e   : > { %v433_v51 = vld [vmem:[#allocation2] sm:$0xff] }
 0x23f   : > { %434 = vst.msk [vmem:[%s242_s22] sm:$0xff] %vm249_vm0, %v433_v51 }
 0x240   : > { %843 = shalt.err (!%p840_p11)
}
 0x241   : > { %s844_s6 = scalar_lea.hbm %s1163_s9, 128  ;;  %s848_s11 = scalar_lea.hbm %s1216_s3, 256 }
 0x242   : > { %p845_p0 = scmp.ne.s32.totalorder %s1163_s9, %s844_s6  ;;  %p849_p6 = scmp.lt.u32.totalorder %s1163_s9, %s1216_s3 }
 0x243   : > { %p850_p7 = scmp.lt.u32.totalorder %s848_s11, %s844_s6  ;;  %p852_p8 = scmp.lt.u32.totalorder %s844_s6, %s1163_s9 }
 0x244   : > { %p846_p4 = pnand %p845_p0, %p1231_p12 }
 0x245   : > { %p851_p2 = por %p850_p7, %p849_p6 }
 0x246   : > { %p847_p13 = pneg %p846_p4 }
 0x247   : > { %p853_p1 = por %p852_p8, %p851_p2 }
 0x249   : > { %p854_p10 = pnand %p853_p1, %p847_p13 }
 0x24b   : > { %857 = shalt.err (!%p854_p10)
}
 0x24c   : > { %662 = dma.vmem_to_hbm [thread:$0]  (%p1231_p12), %s1165_s24, 128, %s1163_s9, %s436_s10  }
 0x24d PF: > { %s461_s27 = sand.u32 1, %s896_s12   ;;  %p1232_p3 = scmp.ne.s32.totalorder %s1224_s23, 0 }
 0x24e   : > { %p1233_p5 = scmp.ge.s32.totalorder %s916_s17, 2  ;;  %s462_s20 = scalar_lea.sflag [#allocation5], %s461_s27 }
 0x250   : > { %p676_p9 = pnand %p1233_p5, %p1232_p3 }
 0x252   : > { %891 = dma.done.wait (!%p676_p9), %s462_s20, 128  }
 0x253   : > { %893 = vsyncadd (!%p676_p9), %s462_s20, 4294967168  ;;  %s20_s17 = sadd.s32 1, %s916_s17   ;;  %s1234_s12 = smov %s900_s13 }
 0x254   : > { %p17_p11 = scmp.ge.s32.totalorder %s20_s17, 4   ;;  %s1235_s13 = smov %s904_s14 }
 0x255   : > { %s1236_s14 = smov %s1091_s5  ;;  %s1237_s15 = smov %s912_s16 }
 0x256   : > { %s1238_s16 = smov %s1240_s19  ;;  %19 = sbr.rel (!%p17_p11) target bundleno = 7 (0x7), region = 95 }
 0x25d   :  { %467 = vsyncpa [#allocation4], 1 }
 0x25e   :  { %469 = vsyncpa [#allocation4 + $0x1], 1 }
 0x25f   :  { %470 = vsyncpa [#allocation7], 1 }
 0x260   :  { %471 = vsyncpa [#allocation5], 1 }
 0x261   :  { %473 = vsyncpa [#allocation5 + $0x1], 1 }

</bundles_post_ra>
